<compile_context>
chip_gen: v5e
topology: v5e:2x2
jax: 0.10.0
libtpu: 0.0.40
codegen_flags: <defaults>
</compile_context>

<pallas_src>
import functools
import math

import jax
import jax.numpy as jnp
from jax import lax
from jax.experimental import pallas as pl
from jax.experimental.pallas import tpu as pltpu


def _round_up(x, m):
    return ((x + m - 1) // m) * m


def _timestep_embedder_kernel(t_ref, w1_ref, b1_ref, w2_ref, b2_ref, out_ref,
                              *, freq_dim, max_period):
    """Fused sinusoidal timestep embedding + Linear -> SiLU -> Linear.

    t_ref  : (BN, 1)        f32   timesteps (one per batch row)
    w1_ref : (freq_dim, H)  bf16  first Linear weight, pre-transposed (in, out)
    b1_ref : (1, H)         f32
    w2_ref : (H, H)         bf16  second Linear weight, pre-transposed (in, out)
    b2_ref : (1, H)         f32
    out_ref: (BN, H)              lane-dense output
    """
    half = freq_dim // 2

    # ---- sinusoidal frequency embedding ----------------------------------
    # Per-lane constants of shape (1, F): lanes [0, half) carry cos, lanes
    # [half, F) carry sin -> same layout as torch.cat([cos, sin], -1).
    #   * freqs: F exps per grid step (not BN*F).
    #   * sin(x) = cos(x - pi/2): a single full-width cos, no select.
    k = lax.broadcasted_iota(jnp.int32, (1, freq_dim), 1)           # (1, F)
    is_cos = k < half
    k_mod = jnp.where(is_cos, k, k - half).astype(jnp.float32)
    freqs = jnp.exp((-math.log(max_period) / half) * k_mod)         # (1, F)
    phase = jnp.where(is_cos, jnp.float32(0.0),
                      jnp.float32(-0.5 * math.pi))                  # (1, F)

    t = t_ref[...]                                                   # (BN, 1)
    emb = jnp.cos(t * freqs + phase)                                 # (BN, F) f32

    # ---- MLP: Linear -> SiLU -> Linear ------------------------------------
    # bf16 operands on the MXU, f32 accumulation; nonlinearity in f32.
    h1 = jnp.dot(emb.astype(jnp.bfloat16), w1_ref[...],
                 preferred_element_type=jnp.float32) + b1_ref[...]   # (BN, H) f32
    act = h1 * jax.nn.sigmoid(h1)                                    # SiLU, f32
    out = jnp.dot(act.astype(jnp.bfloat16), w2_ref[...],
                  preferred_element_type=jnp.float32) + b2_ref[...]  # (BN, H) f32
    out_ref[...] = out.astype(out_ref.dtype)


def _default_block_n(n):
    n8 = _round_up(max(n, 1), 8)
    if n8 >= 512:
        return 256          # fills the 256-tall MXU on v6e/v7x, >=2 grid steps
    if n8 >= 16:
        # Expose >=2 grid steps so the ("parallel",) axis can shard across
        # v7x's two TensorCores; on 1-TC v5e/v6e the extra step (~0.35us) is
        # noise at these sizes.
        return _round_up(n8 // 2, 8)
    return n8


@functools.partial(jax.jit,
                   static_argnames=("max_period", "block_n", "out_dtype"))
def timestep_embedder_forward(t, w1, b1, w2, b2, *, max_period=10000.0,
                              block_n=None, out_dtype=jnp.float32):
    """TimestepEmbedder.forward.

    t  : (N,)   float timesteps
    w1 : (F, H) first Linear weight in (in, out) layout (PyTorch weight.T)
    b1 : (H,)
    w2 : (H, H) second Linear weight in (in, out) layout (PyTorch weight.T)
    b2 : (H,)
    returns (N, H) in `out_dtype` (f32 by default; bf16 halves the HBM
    writeback if the downstream consumer accepts it).
    """
    n = t.shape[0]
    freq_dim, hidden = w1.shape
    assert freq_dim % 2 == 0
    # TODO(synk): odd frequency_embedding_size (extra zero column) not handled;
    # the module default (256) is even.

    if block_n is None:
        block_n = _default_block_n(n)
    n_pad = _round_up(n, block_n)

    # No zeros+scatter glue: reshape only, pad only when N isn't a block
    # multiple (padded rows compute garbage-free t=0 and are sliced off).
    t2d = t.astype(jnp.float32).reshape(n, 1)
    if n_pad != n:
        t2d = jnp.pad(t2d, ((0, n_pad - n), (0, 0)))

    kernel = functools.partial(_timestep_embedder_kernel,
                               freq_dim=freq_dim, max_period=max_period)

    # TODO(synk): for very large hidden (>=4096) add pipeline_mode=pl.Buffered(1)
    # on the resident weight specs (constant index_map) to halve their VMEM
    # footprint; negligible at the hidden sizes used here.
    out = pl.pallas_call(
        kernel,
        out_shape=jax.ShapeDtypeStruct((n_pad, hidden), out_dtype),
        grid=(n_pad // block_n,),
        in_specs=[
            pl.BlockSpec((block_n, 1), lambda i: (i, 0)),            # timesteps
            pl.BlockSpec((freq_dim, hidden), lambda i: (0, 0)),      # W1 (bf16, resident)
            pl.BlockSpec((1, hidden), lambda i: (0, 0)),             # b1 (f32)
            pl.BlockSpec((hidden, hidden), lambda i: (0, 0)),        # W2 (bf16, resident)
            pl.BlockSpec((1, hidden), lambda i: (0, 0)),             # b2 (f32)
        ],
        out_specs=pl.BlockSpec((block_n, hidden), lambda i: (i, 0)),
        compiler_params=pltpu.CompilerParams(
            dimension_semantics=("parallel",)),
    )(t2d,
      w1.astype(jnp.bfloat16), b1.reshape(1, hidden).astype(jnp.float32),
      w2.astype(jnp.bfloat16), b2.reshape(1, hidden).astype(jnp.float32))

    if n_pad != n:
        out = out[:n]
    return out


if __name__ == "__main__":
    key = jax.random.PRNGKey(0)
    k_t, k_w1, k_b1, k_w2, k_b2 = jax.random.split(key, 5)

    batch = 8
    hidden_size = 128           # lane-dense output (multiple of 128)
    freq_dim = 256              # frequency_embedding_size (module default)

    # Diffusion-style timesteps in [0, 1000).
    t = jax.random.uniform(k_t, (batch,), jnp.float32, 0.0, 1000.0)
    # Weights directly in (in, out) layout (i.e. PyTorch nn.Linear weight.T).
    w1 = jax.random.normal(k_w1, (freq_dim, hidden_size), jnp.float32) * 0.02
    b1 = jax.random.normal(k_b1, (hidden_size,), jnp.float32) * 0.02
    w2 = jax.random.normal(k_w2, (hidden_size, hidden_size), jnp.float32) * 0.02
    b2 = jax.random.normal(k_b2, (hidden_size,), jnp.float32) * 0.02

    out = timestep_embedder_forward(t, w1, b1, w2, b2)
    out = jax.block_until_ready(out)
    assert out.shape == (batch, hidden_size), out.shape

    # Pure-JAX f32 reference matching the PyTorch module semantics.
    half = freq_dim // 2
    freqs = jnp.exp(-math.log(10000.0)
                    * jnp.arange(half, dtype=jnp.float32) / half)
    args = t[:, None] * freqs[None]
    emb = jnp.concatenate([jnp.cos(args), jnp.sin(args)], axis=-1)
    h = jnp.dot(emb, w1, precision=lax.Precision.HIGHEST) + b1
    act = h * jax.nn.sigmoid(h)
    ref = jnp.dot(act, w2, precision=lax.Precision.HIGHEST) + b2

    max_err = float(jnp.max(jnp.abs(out - ref)))
    # Kernel uses bf16 MXU operands (f32 accumulation); reference is f32 HIGHEST.
    assert jnp.allclose(out, ref, atol=1e-2, rtol=1e-2), max_err

    print("KERNEL_OK")
</pallas_src>

<mosaic_0001>
module attributes {stable_mosaic.version = 11 : i64} {
  func.func @_timestep_embedder_kernel(%arg0: i32, %arg1: memref<8x1xf32, #tpu.memory_space<vmem>>, %arg2: memref<256x128xbf16, #tpu.memory_space<vmem>>, %arg3: memref<1x128xf32, #tpu.memory_space<vmem>>, %arg4: memref<128x128xbf16, #tpu.memory_space<vmem>>, %arg5: memref<1x128xf32, #tpu.memory_space<vmem>>, %arg6: memref<8x128xf32, #tpu.memory_space<vmem>>) attributes {dimension_semantics = [#tpu.dimension_semantics<parallel>], iteration_bounds = array<i64: 1>, scalar_prefetch = 0 : i64, scratch_operands = 0 : i64, tpu.core_type = #tpu.core_type<tc>, window_params = [{transform_indices = @transform_0, window_bounds = array<i64: 8, 1>}, {pipeline_mode = #tpu.pipeline_mode<synchronous>, transform_indices = @transform_1, window_bounds = array<i64: 256, 128>}, {pipeline_mode = #tpu.pipeline_mode<synchronous>, transform_indices = @transform_2, window_bounds = array<i64: 1, 128>}, {pipeline_mode = #tpu.pipeline_mode<synchronous>, transform_indices = @transform_3, window_bounds = array<i64: 128, 128>}, {pipeline_mode = #tpu.pipeline_mode<synchronous>, transform_indices = @transform_4, window_bounds = array<i64: 1, 128>}, {transform_indices = @transform_5, window_bounds = array<i64: 8, 128>}]} {
    %0 = tpu.iota {dimensions = array<i32: 1>} : vector<1x256xi32>
    %c128_i32 = arith.constant 128 : i32
    %1 = vector.broadcast %c128_i32 : i32 to vector<1x256xi32>
    %2 = arith.cmpi slt, %0, %1 : vector<1x256xi32>
    %c128_i32_0 = arith.constant 128 : i32
    %3 = vector.broadcast %c128_i32_0 : i32 to vector<1x256xi32>
    %4 = arith.subi %0, %3 : vector<1x256xi32>
    %5 = arith.select %2, %0, %4 : vector<1x256xi1>, vector<1x256xi32>
    %6 = arith.sitofp %5 : vector<1x256xi32> to vector<1x256xf32>
    %cst = arith.constant -0.0719557852 : f32
    %7 = vector.broadcast %cst : f32 to vector<1x256xf32>
    %8 = arith.mulf %7, %6 : vector<1x256xf32>
    %9 = math.exp %8 : vector<1x256xf32>
    %cst_1 = arith.constant 0.000000e+00 : f32
    %cst_2 = arith.constant -1.57079637 : f32
    %10 = vector.broadcast %cst_1 : f32 to vector<1x256xf32>
    %11 = vector.broadcast %cst_2 : f32 to vector<1x256xf32>
    %12 = arith.select %2, %10, %11 : vector<1x256xi1>, vector<1x256xf32>
    %c0 = arith.constant 0 : index
    %c0_3 = arith.constant 0 : index
    %13 = vector.load %arg1[%c0, %c0_3] : memref<8x1xf32, #tpu.memory_space<vmem>>, vector<8x1xf32>
    %14 = vector.broadcast %13 : vector<8x1xf32> to vector<8x256xf32>
    %15 = vector.broadcast %9 : vector<1x256xf32> to vector<8x256xf32>
    %16 = arith.mulf %14, %15 : vector<8x256xf32>
    %17 = vector.broadcast %12 : vector<1x256xf32> to vector<8x256xf32>
    %18 = arith.addf %16, %17 : vector<8x256xf32>
    %19 = math.cos %18 : vector<8x256xf32>
    %20 = arith.truncf %19 : vector<8x256xf32> to vector<8x256xbf16>
    %c0_4 = arith.constant 0 : index
    %c0_5 = arith.constant 0 : index
    %21 = vector.load %arg2[%c0_4, %c0_5] : memref<256x128xbf16, #tpu.memory_space<vmem>>, vector<256x128xbf16>
    %cst_6 = arith.constant dense<0.000000e+00> : vector<8x128xf32>
    %22 = tpu.matmul %20, %21, %cst_6 {dimension_numbers = #tpu.dot_dimension_numbers<[1], [0], [0], [1], [0, 0, 1, 1], [], []>} : vector<8x256xbf16>, vector<256x128xbf16>, vector<8x128xf32> -> vector<8x128xf32>
    %c0_7 = arith.constant 0 : index
    %c0_8 = arith.constant 0 : index
    %23 = vector.load %arg3[%c0_7, %c0_8] : memref<1x128xf32, #tpu.memory_space<vmem>>, vector<1x128xf32>
    %24 = vector.broadcast %23 : vector<1x128xf32> to vector<8x128xf32>
    %25 = arith.addf %22, %24 : vector<8x128xf32>
    %26 = arith.negf %25 : vector<8x128xf32>
    %27 = math.exp %26 : vector<8x128xf32>
    %cst_9 = arith.constant 1.000000e+00 : f32
    %28 = vector.broadcast %cst_9 : f32 to vector<8x128xf32>
    %29 = arith.addf %28, %27 : vector<8x128xf32>
    %30 = arith.divf %28, %29 : vector<8x128xf32>
    %31 = arith.mulf %25, %30 : vector<8x128xf32>
    %32 = arith.truncf %31 : vector<8x128xf32> to vector<8x128xbf16>
    %c0_10 = arith.constant 0 : index
    %c0_11 = arith.constant 0 : index
    %33 = vector.load %arg4[%c0_10, %c0_11] : memref<128x128xbf16, #tpu.memory_space<vmem>>, vector<128x128xbf16>
    %cst_12 = arith.constant dense<0.000000e+00> : vector<8x128xf32>
    %34 = tpu.matmul %32, %33, %cst_12 {dimension_numbers = #tpu.dot_dimension_numbers<[1], [0], [0], [1], [0, 0, 1, 1], [], []>} : vector<8x128xbf16>, vector<128x128xbf16>, vector<8x128xf32> -> vector<8x128xf32>
    %c0_13 = arith.constant 0 : index
    %c0_14 = arith.constant 0 : index
    %35 = vector.load %arg5[%c0_13, %c0_14] : memref<1x128xf32, #tpu.memory_space<vmem>>, vector<1x128xf32>
    %36 = vector.broadcast %35 : vector<1x128xf32> to vector<8x128xf32>
    %37 = arith.addf %34, %36 : vector<8x128xf32>
    %c0_15 = arith.constant 0 : index
    %c0_16 = arith.constant 0 : index
    %38 = vector.load %arg6[%c0_15, %c0_16] : memref<8x128xf32, #tpu.memory_space<vmem>>, vector<8x128xf32>
    tpu.vector_store %arg6[%c0_15, %c0_16], %37 {strides = array<i32>} : memref<8x128xf32, #tpu.memory_space<vmem>>, vector<8x128xf32>,
    return
  }
  func.func @transform_0(%arg0: i32) -> (i32, i32) {
    %c0_i32 = arith.constant 0 : i32
    %c0_i32_0 = arith.constant 0 : i32
    return %arg0, %c0_i32 : i32, i32
  }
  func.func @transform_1(%arg0: i32) -> (i32, i32) {
    %c0_i32 = arith.constant 0 : i32
    %c0_i32_0 = arith.constant 0 : i32
    %c0_i32_1 = arith.constant 0 : i32
    return %c0_i32, %c0_i32_0 : i32, i32
  }
  func.func @transform_2(%arg0: i32) -> (i32, i32) {
    %c0_i32 = arith.constant 0 : i32
    %c0_i32_0 = arith.constant 0 : i32
    %c0_i32_1 = arith.constant 0 : i32
    return %c0_i32, %c0_i32_0 : i32, i32
  }
  func.func @transform_3(%arg0: i32) -> (i32, i32) {
    %c0_i32 = arith.constant 0 : i32
    %c0_i32_0 = arith.constant 0 : i32
    %c0_i32_1 = arith.constant 0 : i32
    return %c0_i32, %c0_i32_0 : i32, i32
  }
  func.func @transform_4(%arg0: i32) -> (i32, i32) {
    %c0_i32 = arith.constant 0 : i32
    %c0_i32_0 = arith.constant 0 : i32
    %c0_i32_1 = arith.constant 0 : i32
    return %c0_i32, %c0_i32_0 : i32, i32
  }
  func.func @transform_5(%arg0: i32) -> (i32, i32) {
    %c0_i32 = arith.constant 0 : i32
    %c0_i32_0 = arith.constant 0 : i32
    return %arg0, %c0_i32 : i32, i32
  }
}

</mosaic_0001>

<bundles_post_ra>
// kernel: timestep_embedder_forward.1
= control target key start
LH: loop header
LB: loop body
LE: loop exit
PB: predicated region body
PF: predicated region fallthrough
CT: control target
= control target key end

     0   :  { %v807_v1 = vmov 0   ;;  %s1119_s0 = inlined_call_operand.vmem [shape: f32[8,1], index: 0, kind: input, shape index: {}]   ;;  %s1120_s1 = inlined_call_operand.vmem [shape: bf16[256,128], index: 1, kind: input, shape index: {}]   ;;  %s1121_s2 = inlined_call_operand.vmem [shape: f32[1,128], index: 2, kind: input, shape index: {}]   ;;  %s1122_s3 = inlined_call_operand.vmem [shape: bf16[128,128], index: 3, kind: input, shape index: {}]   ;;  %s1123_s4 = inlined_call_operand.vmem [shape: f32[1,128], index: 4, kind: input, shape index: {}]   ;;  %s1124_s5 = inlined_call_operand.hbm [shape: f32[8,128], index: 5, kind: output, shape index: {}]  }
   0x1   :  { %v39_v0 = vld [vmem:[%s1119_s0] sm:$0xff]  ;;  %772 = vset.pattern.permute.xlu0 %v807_v1 }
   0x2   :  { %10 = vsyncpa [#allocation3], 0  ;;  %42 = vperm.xlu0 %772, %v39_v0   ;;  %v21_v2 = vlaneseq  ;;  %v747_v5 = vld [vmem:[%s1120_s1 + $0x38] sm:$0xff]  ;;  %v746_v8 = vld [vmem:[%s1120_s1 + $0x30] sm:$0xff]  ;;  %v808_v48 = vmov 683565275  }
   0x3   :  { %v755_v6 = vld [vmem:[%s1120_s1 + $0x78] sm:$0xff]  ;;  %491 = vmatpush.bf16.msra.mxu0 %v747_v5  ;;  %v754_v9 = vld [vmem:[%s1120_s1 + $0x70] sm:$0xff]  ;;  %v745_v11 = vld [vmem:[%s1120_s1 + $0x28] sm:$0xff]  ;;  %v809_v50 = vmov 2475754826   ;;  %s814_s17 = smov [#allocation2]  }
   0x4   :  { %v22_v3 = vand.u32 127, %v21_v2  ;;  %504 = vmatpush.bf16.msra.mxu1 %v755_v6  ;;  %v753_v12 = vld [vmem:[%s1120_s1 + $0x68] sm:$0xff]  ;;  %v744_v13 = vld [vmem:[%s1120_s1 + $0x20] sm:$0xff]  ;;  %v743_v15 = vld [vmem:[%s1120_s1 + $0x18] sm:$0xff]  ;;  %v810_v53 = vmov 2131351028  }
   0x5   :  { %v752_v14 = vld [vmem:[%s1120_s1 + $0x60] sm:$0xff]  ;;  %v751_v16 = vld [vmem:[%s1120_s1 + $0x58] sm:$0xff]  ;;  %v742_v20 = vld [vmem:[%s1120_s1 + $0x10] sm:$0xff]  ;;  %v811_v56 = vmov 2102212464   ;;  %s625_s18 = sshll.u32 %s814_s17, 4  ;;  %s626_s18 = int_to_ptr.vmem [resolvable:$true] %s625_s18 }
   0x6   :  { %v29_v4 = vcvt.s32.f32 %v22_v3  ;;  %v750_v21 = vld [vmem:[%s1120_s1 + $0x50] sm:$0xff]  ;;  %v741_v26 = vld [vmem:[%s1120_s1 + $0x8] sm:$0xff]  ;;  %v740_v35 = vld [vmem:[%s1120_s1] sm:$0xff]  ;;  %v812_v59 = vmov 920167782   ;;  %s627_s21 = sshll.u32 %s1124_s5, 4  ;;  %s628_s21 = int_to_ptr.hbm [resolvable:$true] %s627_s21 }
   0x7   :  { %492 = vmatpush.bf16.msra.mxu0 %v746_v8  ;;  %v749_v27 = vld [vmem:[%s1120_s1 + $0x48] sm:$0xff]  ;;  %v748_v36 = vld [vmem:[%s1120_s1 + $0x40] sm:$0xff]  ;;  %v813_v62 = vmov 1326507024  }
   0x8   :  { %v31_v7 = vmul.f32 -0.071955785, %v29_v4  ;;  %505 = vmatpush.bf16.msra.mxu1 %v754_v9 }
   0xa   :  { %v33_v10 = vmul.f32 1.442695, %v31_v7 }
   0xb   :  { %493 = vmatpush.bf16.msra.mxu0 %v745_v11 }
   0xc   :  { %775 = vpow2.f32 %v33_v10  ;;  %506 = vmatpush.bf16.msra.mxu1 %v753_v12 }
   0xf   :  { %494 = vmatpush.bf16.msra.mxu0 %v744_v13 }
  0x10   :  { %507 = vmatpush.bf16.msra.mxu1 %v752_v14 }
  0x12   :  { %v776_v17 = vpop.eup %775 }
  0x13   :  { %495 = vmatpush.bf16.msra.mxu0 %v743_v15 }
  0x14   :  { %508 = vmatpush.bf16.msra.mxu1 %v751_v16 }
  0x17   :  { %496 = vmatpush.bf16.msra.mxu0 %v742_v20 }
  0x18   :  { %509 = vmatpush.bf16.msra.mxu1 %v750_v21 }
  0x1b   :  { %497 = vmatpush.bf16.msra.mxu0 %v741_v26 }
  0x1c   :  { %510 = vmatpush.bf16.msra.mxu1 %v749_v27 }
  0x1f   :  { %498 = vmatpush.bf16.msra.mxu0 %v740_v35 }
  0x20   :  { %511 = vmatpush.bf16.msra.mxu1 %v748_v36 }
  0x74   :  { %v43_v18 = vpop.permute.xlu0 %42 }
  0x75   :  { %v879_v19 = vmul.f32 %v776_v17, %v43_v18 }
  0x77   :  { %v52_v22 = vand.u32 2139095040, %v879_v19  ;;  %v49_v23 = vand.u32 2147483647, %v879_v19  ;;  %v890_v24 = vadd.f32 -1.5707964, %v879_v19 }
  0x79   :  { %v53_v25 = vshrl.u32 %v52_v22, 23  ;;  %v56_v28 = vand.u32 8388607, %v49_v23  ;;  %v206_v29 = vand.u32 2139095040, %v890_v24  ;;  %v203_v32 = vand.u32 2147483647, %v890_v24 }
  0x7b   :  { %v637_v30 = vadd.s32 4294967169, %v53_v25  ;;  %v57_v31 = vor.u32 8388608, %v56_v28  ;;  %v207_v33 = vshrl.u32 %v206_v29, 23  ;;  %v210_v39 = vand.u32 8388607, %v203_v32 }
  0x7d   :  { %v59_v34 = vadd.s32 1, %v637_v30  ;;  %v640_v37 = vadd.s32 4294967169, %v207_v33  ;;  %v908_v38 = vshll.u32 %v57_v31, 8  ;;  %v211_v46 = vor.u32 8388608, %v210_v39 }
  0x7f   :  { %vm60_vm0 = vcmp.gt.s32.totalorder %v59_v34, 0  ;;  %v213_v41 = vadd.s32 1, %v640_v37  ;;  %v913_v44 = vand.u32 65535, %v908_v38  ;;  %v916_v45 = vshrl.u32 %v908_v38, 16 }
  0x80   :  { %v61_v40 = vsel %vm60_vm0, %v59_v34, 0  ;;  %v935_v10 = vshll.u32 %v211_v46, 8 }
  0x81   :  { %v63_v42 = vand.u32 31, %v61_v40  ;;  %v918_v47 = vshrl.u32 %v61_v40, 5  ;;  %vm214_vm1 = vcmp.gt.s32.totalorder %v213_v41, 0 }
  0x82   :  { %v215_v4 = vsel %vm214_vm1, %v213_v41, 0 }
  0x83   :  { %v64_v43 = vsub.s32 32, %v63_v42  ;;  %v66_v49 = vshll.u32 %v808_v48, %v63_v42  ;;  %v69_v51 = vshll.u32 %v809_v50, %v63_v42  ;;  %v72_v55 = vshll.u32 %v810_v53, %v63_v42 }
  0x84   :  { %v75_v58 = vshll.u32 %v811_v56, %v63_v42  ;;  %v78_v61 = vshll.u32 %v812_v59, %v63_v42  ;;  %vm81_vm2 = vcmp.lt.s32.totalorder %v918_v47, 1  ;;  %v928_v7 = vand.u32 31, %v215_v4 }
  0x85   :  { %v67_v52 = vshrl.u32 %v809_v50, %v64_v43  ;;  %v70_v54 = vshrl.u32 %v810_v53, %v64_v43  ;;  %v73_v57 = vshrl.u32 %v811_v56, %v64_v43  ;;  %v76_v60 = vshrl.u32 %v812_v59, %v64_v43 }
  0x86   :  { %v79_v63 = vshrl.u32 %v813_v62, %v64_v43  ;;  %vm84_vm3 = vcmp.lt.s32.totalorder %v918_v47, 4  ;;  %vm83_vm4 = vcmp.lt.s32.totalorder %v918_v47, 3  ;;  %v939_v13 = vsub.s32 32, %v928_v7 }
  0x87   :  { %v68_v0 = vor.u32 %v67_v52, %v66_v49  ;;  %v71_v2 = vor.u32 %v70_v54, %v69_v51  ;;  %v74_v3 = vor.u32 %v73_v57, %v72_v55  ;;  %v77_v5 = vor.u32 %v76_v60, %v75_v58 }
  0x88   :  { %v80_v6 = vor.u32 %v79_v63, %v78_v61  ;;  %vm82_vm5 = vcmp.lt.s32.totalorder %v918_v47, 2  ;;  %v65_v17 = vshrl.u32 %v808_v48, %v64_v43  ;;  %v951_v21 = vshrl.u32 %v215_v4, 5 }
  0x89   :  { %v89_v8 = vsel %vm81_vm2, %v68_v0, %v71_v2  ;;  %v93_v9 = vsel %vm81_vm2, %v71_v2, %v74_v3  ;;  %v90_v11 = vsel %vm84_vm3, %v77_v5, 920167782  ;;  %v86_v14 = vsel %vm84_vm3, %v74_v3, 2102212464 }
  0x8a   :  { %v94_v12 = vsel %vm84_vm3, %v80_v6, 1326507024  ;;  %v91_v15 = vsel %vm83_vm4, %v74_v3, %v90_v11  ;;  %v85_v28 = vsel %vm81_vm2, %v65_v17, %v68_v0  ;;  %v87_v29 = vsel %vm83_vm4, %v71_v2, %v86_v14 }
  0x8b   :  { %v95_v16 = vsel %vm83_vm4, %v77_v5, %v94_v12  ;;  %v92_v18 = vsel %vm82_vm5, %v89_v8, %v91_v15  ;;  %v220_v30 = vshll.u32 %v808_v48, %v928_v7  ;;  %v221_v31 = vshrl.u32 %v809_v50, %v939_v13 }
  0x8c   :  { %v96_v20 = vsel %vm82_vm5, %v93_v9, %v95_v16  ;;  %v122_v26 = vand.u32 65535, %v92_v18  ;;  %v123_v27 = vshrl.u32 %v92_v18, 16  ;;  %v223_v35 = vshll.u32 %v809_v50, %v928_v7 }
  0x8d   :  { %v100_v22 = vand.u32 65535, %v96_v20  ;;  %v101_v25 = vshrl.u32 %v96_v20, 16  ;;  %v224_v36 = vshrl.u32 %v810_v53, %v939_v13  ;;  %v226_v41 = vshll.u32 %v810_v53, %v928_v7 }
  0x8e   :  { %v125_v39 = vmul.u32 %v123_v27, %v913_v44  ;;  %v126_v40 = vmul.u32 %v122_v26, %v916_v45  ;;  %v124_v46 = vmul.u32 %v122_v26, %v913_v44  ;;  %v127_v49 = vmul.u32 %v123_v27, %v916_v45 }
  0x8f   :  { %v103_v33 = vmul.u32 %v101_v25, %v913_v44  ;;  %v104_v34 = vmul.u32 %v100_v22, %v916_v45  ;;  %v102_v37 = vmul.u32 %v100_v22, %v913_v44  ;;  %v105_v42 = vmul.u32 %v101_v25, %v916_v45 }
  0x90   :  { %v128_v54 = vshll.u32 %v125_v39, 16  ;;  %v129_v57 = vshrl.u32 %v125_v39, 16  ;;  %v130_v58 = vshll.u32 %v126_v40, 16  ;;  %v227_v53 = vshrl.u32 %v811_v56, %v939_v13 }
  0x91   :  { %v106_v43 = vshll.u32 %v103_v33, 16  ;;  %v107_v51 = vshrl.u32 %v103_v33, 16  ;;  %v108_v52 = vshll.u32 %v104_v34, 16  ;;  %v109_v50 = vshrl.u32 %v104_v34, 16 }
  0x92   :  { %vm132_vm7 = vc.u32 %v124_v46, %v128_v54  ;;  %v134_v61 = vadd.s32 %v128_v54, %v124_v46  ;;  %v975_v45 = vor.u32 %v221_v31, %v220_v30  ;;  %v978_v3 = vor.u32 %v224_v36, %v223_v35 }
  0x93   :  { %vm110_vm6 = vc.u32 %v102_v37, %v106_v43  ;;  %v112_v55 = vadd.s32 %v106_v43, %v102_v37  ;;  %v133_v44 = vsel %vm132_vm7, 1, %v807_v1  ;;  %v229_v6 = vshll.u32 %v811_v56, %v928_v7 }
  0x94   :  { %v111_v60 = vsel %vm110_vm6, 1, %v807_v1  ;;  %v135_v2 = vadd.s32 %v133_v44, %v127_v49  ;;  %vm136_vm9 = vc.u32 %v134_v61, %v130_v58  ;;  %v230_v8 = vshrl.u32 %v812_v59, %v939_v13 }
  0x95   :  { %v113_v63 = vadd.s32 %v111_v60, %v105_v42  ;;  %vm114_vm8 = vc.u32 %v112_v55, %v108_v52  ;;  %v137_v5 = vsel %vm136_vm9, 1, %v807_v1  ;;  %v228_v11 = vor.u32 %v227_v53, %v226_v41 }
  0x96   :  { %v115_v0 = vsel %vm114_vm8, 1, %v807_v1  ;;  %v139_v9 = vadd.s32 %v137_v5, %v135_v2  ;;  %v232_v12 = vshll.u32 %v812_v59, %v928_v7  ;;  %v233_v14 = vshrl.u32 %v813_v62, %v939_v13 }
  0x97   :  { %v117_v4 = vadd.s32 %v115_v0, %v113_v63  ;;  %v131_v16 = vshrl.u32 %v126_v40, 16  ;;  %v989_v17 = vadd.s32 %v134_v61, %v130_v58  ;;  %v231_v18 = vor.u32 %v230_v8, %v229_v6 }
  0x98   :  { %v140_v20 = vadd.s32 %v139_v9, %v129_v57  ;;  %v234_v22 = vor.u32 %v233_v14, %v232_v12  ;;  %vm235_vm10 = vcmp.lt.s32.totalorder %v951_v21, 1  ;;  %vm238_vm11 = vcmp.lt.s32.totalorder %v951_v21, 4 }
  0x99   :  { %v118_v15 = vadd.s32 %v117_v4, %v107_v51  ;;  %vm237_vm12 = vcmp.lt.s32.totalorder %v951_v21, 3  ;;  %v243_v59 = vsel %vm235_vm10, %v975_v45, %v978_v3  ;;  %v244_v62 = vsel %vm238_vm11, %v231_v18, 920167782 }
  0x9a   :  { %v88_v7 = vsel %vm82_vm5, %v85_v28, %v87_v29  ;;  %v141_v25 = vadd.s32 %v140_v20, %v131_v16  ;;  %vm236_vm13 = vcmp.lt.s32.totalorder %v951_v21, 2  ;;  %v245_v26 = vsel %vm237_vm12, %v228_v11, %v244_v62 }
  0x9b   :  { %v993_v56 = vadd.s32 %v118_v15, %v109_v50  ;;  %v246_v27 = vsel %vm236_vm13, %v243_v59, %v245_v26  ;;  %v247_v30 = vsel %vm235_vm10, %v978_v3, %v228_v11  ;;  %v252_v31 = vand.u32 65535, %v935_v10 }
  0x9c   :  { %v145_v47 = vadd.s32 1, %v141_v25  ;;  %v248_v28 = vsel %vm238_vm11, %v234_v22, 1326507024  ;;  %v276_v29 = vand.u32 65535, %v246_v27  ;;  %v277_v33 = vshrl.u32 %v246_v27, 16 }
  0x9d   :  { %vm144_vm14 = vc.u32 %v993_v56, %v989_v17  ;;  %v142_v34 = vmul.u32 %v908_v38, %v88_v7  ;;  %v249_v35 = vsel %vm237_vm12, %v231_v18, %v248_v28  ;;  %v253_v39 = vshrl.u32 %v935_v10, 16 }
  0x9e   :  { %v146_v36 = vsel %vm144_vm14, %v145_v47, %v141_v25  ;;  %v250_v37 = vsel %vm236_vm13, %v247_v30, %v249_v35  ;;  %v279_v40 = vmul.u32 %v277_v33, %v252_v31  ;;  %v278_v46 = vmul.u32 %v276_v29, %v252_v31 }
  0x9f   :  { %v147_v41 = vadd.s32 %v146_v36, %v142_v34  ;;  %v254_v42 = vand.u32 65535, %v250_v37  ;;  %v255_v43 = vshrl.u32 %v250_v37, 16  ;;  %v280_v49 = vmul.u32 %v276_v29, %v253_v39 }
  0xa0   :  { %v282_v51 = vshll.u32 %v279_v40, 16  ;;  %v281_v58 = vmul.u32 %v277_v33, %v253_v39  ;;  %v219_v4 = vshrl.u32 %v808_v48, %v939_v13  ;;  %v240_v9 = vsel %vm238_vm11, %v228_v11, 2102212464 }
  0xa1   :  { %v148_v52 = vadd.s32 536870912, %v147_v41  ;;  %v257_v50 = vmul.u32 %v255_v43, %v252_v31  ;;  %v258_v54 = vmul.u32 %v254_v42, %v253_v39  ;;  %v256_v55 = vmul.u32 %v254_v42, %v252_v31 }
  0xa2   :  { %vm286_vm15 = vc.u32 %v278_v46, %v282_v51  ;;  %v259_v60 = vmul.u32 %v255_v43, %v253_v39  ;;  %v284_v61 = vshll.u32 %v280_v49, 16  ;;  %v288_v63 = vadd.s32 %v282_v51, %v278_v46 }
  0xa3   :  { %v1023_v38 = vshrl.u32 %v148_v52, 30  ;;  %v260_v57 = vshll.u32 %v257_v50, 16  ;;  %v287_v53 = vsel %vm286_vm15, 1, %v807_v1  ;;  %v262_v0 = vshll.u32 %v258_v54, 16 }
  0xa4   :  { %v289_v6 = vadd.s32 %v287_v53, %v281_v58  ;;  %vm290_vm1 = vc.u32 %v288_v63, %v284_v61  ;;  %v239_v48 = vsel %vm235_vm10, %v219_v4, %v975_v45  ;;  %v241_v18 = vsel %vm237_vm12, %v978_v3, %v240_v9 }
  0xa5   :  { %v150_v44 = vshll.u32 %v1023_v38, 30  ;;  %vm264_vm0 = vc.u32 %v256_v55, %v260_v57  ;;  %v266_v2 = vadd.s32 %v260_v57, %v256_v55  ;;  %v291_v15 = vsel %vm290_vm1, 1, %v807_v1 }
  0xa6   :  { %v265_v5 = vsel %vm264_vm0, 1, %v807_v1  ;;  %v261_v20 = vshrl.u32 %v257_v50, 16  ;;  %v283_v22 = vshrl.u32 %v279_v40, 16  ;;  %v293_v11 = vadd.s32 %v291_v15, %v289_v6 }
  0xa7   :  { %v151_v8 = vsub.s32 %v147_v41, %v150_v44  ;;  %v267_v12 = vadd.s32 %v265_v5, %v259_v60  ;;  %vm268_vm2 = vc.u32 %v266_v2, %v262_v0  ;;  %v285_v62 = vshrl.u32 %v280_v49, 16 }
  0xa8   :  { %v269_v14 = vsel %vm268_vm2, 1, %v807_v1  ;;  %v263_v25 = vshrl.u32 %v258_v54, 16  ;;  %v294_v1 = vadd.s32 %v293_v11, %v283_v22  ;;  %v242_v27 = vsel %vm236_vm13, %v239_v48, %v241_v18 }
  0xa9   :  { %vm152_vm3 = vcmp.lt.s32.totalorder %v151_v8, 0  ;;  %v153_v16 = vsub.s32 0, %v151_v8  ;;  %v271_v13 = vadd.s32 %v269_v14, %v267_v12  ;;  %v292_v45 = vadd.s32 %v288_v63, %v284_v61 }
  0xaa   :  { %v295_v47 = vadd.s32 %v294_v1, %v285_v62  ;;  %v296_v29 = vmul.u32 %v935_v10, %v242_v27  ;;  %v143_v33 = vadd.s32 %v989_v17, %v993_v56  ;;  %vm51_vm7 = vcmp.lt.s32.totalorder %v879_v19, 0 }
  0xab   :  { %v154_v59 = vsel %vm152_vm3, %v153_v16, %v151_v8  ;;  %v272_v26 = vadd.s32 %v271_v13, %v261_v20  ;;  %vm1051_vm8 = vcmp.le.f32.partialorder %v49_v23, 0.7853982  ;;  %v173_v2 = vsub.s32 4, %v1023_v38 }
  0xac   :  { %v155_v7 = vclz %v154_v59  ;;  %v299_v28 = vadd.s32 1, %v295_v47  ;;  %vm205_vm13 = vcmp.lt.s32.totalorder %v890_v24, 0  ;;  %vm192_vm14 = vweird.f32 %v879_v19 }
  0xad   :  { %v273_v31 = vadd.s32 %v272_v26, %v263_v25  ;;  %v174_v16 = vsel %vm51_vm7, %v173_v2, %v1023_v38  ;;  %vm1070_vm15 = vcmp.le.f32.partialorder %v203_v32, 0.7853982  ;;  %vm346_vm3 = vweird.f32 %v890_v24 }
  0xae   :  { %v638_v30 = vadd.s32 4294967294, %v155_v7  ;;  %v176_v59 = vsel %vm1051_vm8, 0, %v174_v16  ;;  %v756_v16 = vld [vmem:[%s1122_s3] sm:$0xff] }
  0xaf   :  { %vm298_vm5 = vc.u32 %v273_v31, %v292_v45  ;;  %v297_v6 = vadd.s32 %v292_v45, %v273_v31  ;;  %v193_v27 = vand.u32 3, %v176_v59 }
  0xb0   :  { %vm639_vm4 = vcmp.lt.s32.totalorder %v638_v30, 0  ;;  %v300_v36 = vsel %vm298_vm5, %v299_v28, %v295_v47 }
  0xb1   :  { %v158_v3 = vsel %vm639_vm4, 0, %v638_v30  ;;  %v301_v37 = vadd.s32 %v300_v36, %v296_v29  ;;  %vm195_vm10 = vcmp.eq.s32.totalorder %v193_v27, 0  ;;  %vm198_vm11 = vcmp.eq.s32.totalorder %v193_v27, 2 }
  0xb2   :  { %v159_v34 = vsub.s32 32, %v158_v3  ;;  %v163_v35 = vsub.s32 4294967266, %v158_v3  ;;  %v160_v39 = vshll.u32 %v151_v8, %v158_v3  ;;  %vm194_vm12 = vcmp.lt.s32.totalorder %v193_v27, 2 }
  0xb3   :  { %v302_v41 = vadd.s32 536870912, %v301_v37 }
  0xb4   :  { %v161_v21 = vshrl.u32 %v143_v33, %v159_v34  ;;  %v164_v40 = vadd.s32 127, %v163_v35 }
  0xb5   :  { %v1045_v46 = vshrl.u32 %v302_v41, 30 }
  0xb6   :  { %v162_v42 = vor.u32 %v161_v21, %v160_v39  ;;  %v165_v43 = vshll.u32 %v164_v40, 23 }
  0xb7   :  { %v304_v51 = vshll.u32 %v1045_v46, 30 }
  0xb8   :  { %v166_v49 = vor.u32 4788187, %v165_v43  ;;  %v169_v10 = vcvt.s32.f32 %v162_v42  ;;  %v327_v42 = vsub.s32 4, %v1045_v46 }
  0xb9   :  { %v305_v50 = vsub.s32 %v301_v37, %v304_v51 }
  0xba   :  { %v167_v52 = vand.u32 2147483647, %v166_v49 }
  0xbb   :  { %vm306_vm6 = vcmp.lt.s32.totalorder %v305_v50, 0  ;;  %v307_v17 = vsub.s32 0, %v305_v50 }
  0xbc   :  { %v170_v54 = vmul.f32 %v169_v10, %v167_v52  ;;  %v328_v52 = vsel %vm205_vm13, %v327_v42, %v1045_v46 }
  0xbd   :  { %v308_v55 = vsel %vm306_vm6, %v307_v17, %v305_v50 }
  0xbe   :  { %v171_v56 = vxor.u32 2147483648, %v170_v54  ;;  %v309_v60 = vclz %v308_v55 }
  0xc0   :  { %v172_v58 = vsel %vm51_vm7, %v171_v56, %v170_v54  ;;  %v641_v63 = vadd.s32 4294967294, %v309_v60  ;;  %v330_v54 = vsel %vm1070_vm15, 0, %v328_v52 }
  0xc1   :  { %v175_v61 = vsel %vm1051_vm8, %v879_v19, %v172_v58  ;;  %v347_v58 = vand.u32 3, %v330_v54 }
  0xc2   :  { %v177_v53 = vmul.f32 %v175_v61, %v175_v61  ;;  %vm642_vm9 = vcmp.lt.s32.totalorder %v641_v63, 0 }
  0xc3   :  { %v312_v4 = vsel %vm642_vm9, 0, %v641_v63  ;;  %vm349_vm0 = vcmp.eq.s32.totalorder %v347_v58, 0  ;;  %vm352_vm1 = vcmp.eq.s32.totalorder %v347_v58, 2  ;;  %vm348_vm2 = vcmp.lt.s32.totalorder %v347_v58, 2 }
  0xc4   :  { %v178_v44 = vmul.f32 -0.001358992, %v177_v53  ;;  %v185_v0 = vmul.f32 -0.00019511016, %v177_v53  ;;  %v313_v8 = vsub.s32 32, %v312_v4  ;;  %v317_v9 = vsub.s32 4294967266, %v312_v4 }
  0xc5   :  { %v314_v48 = vshll.u32 %v305_v50, %v312_v4  ;;  %v763_v4 = vld [vmem:[%s1122_s3 + $0x38] sm:$0xff] }
  0xc6   :  { %v179_v23 = vadd.f32 0.041655596, %v178_v44  ;;  %v186_v5 = vadd.f32 0.008332121, %v185_v0  ;;  %v315_v15 = vshrl.u32 %v297_v6, %v313_v8  ;;  %v318_v13 = vadd.s32 127, %v317_v9  ;;  %606 = vmatpush.bf16.msra.mxu2 %v763_v4  ;;  %v759_v8 = vld [vmem:[%s1122_s3 + $0x18] sm:$0xff] }
  0xc8   :  { %v180_v12 = vmul.f32 %v179_v23, %v177_v53  ;;  %v187_v14 = vmul.f32 %v186_v5, %v177_v53  ;;  %v316_v22 = vor.u32 %v315_v15, %v314_v48  ;;  %v319_v11 = vshll.u32 %v318_v13, 23  ;;  %v762_v23 = vld [vmem:[%s1122_s3 + $0x30] sm:$0xff]  ;;  %v761_v5 = vld [vmem:[%s1122_s3 + $0x28] sm:$0xff]  ;;  %v773_v15 = vld [vmem:[%s1121_s2] ss:$0 sm:$0xff] }
  0xca   :  { %v181_v18 = vadd.f32 -0.4999988, %v180_v12  ;;  %v188_v20 = vadd.f32 -0.16666654, %v187_v14  ;;  %v320_v25 = vor.u32 4788187, %v319_v11  ;;  %v323_v31 = vcvt.s32.f32 %v316_v22  ;;  %607 = vmatpush.bf16.msra.mxu2 %v762_v23 }
  0xcb   :  { %v758_v12 = vld [vmem:[%s1122_s3 + $0x10] sm:$0xff]  ;;  %v757_v14 = vld [vmem:[%s1122_s3 + $0x8] sm:$0xff] }
  0xcc   :  { %v182_v62 = vmul.f32 %v181_v18, %v177_v53  ;;  %v189_v7 = vmul.f32 %v188_v20, %v177_v53  ;;  %v321_v30 = vand.u32 2147483647, %v320_v25 }
  0xce   :  { %v183_v26 = vadd.f32 1.0, %v182_v62  ;;  %v190_v1 = vadd.f32 1.0, %v189_v7  ;;  %v324_v38 = vmul.f32 %v323_v31, %v321_v30  ;;  %608 = vmatpush.bf16.msra.mxu2 %v761_v5 }
  0xd0   :  { %v191_v45 = vmul.f32 %v190_v1, %v175_v61  ;;  %v199_v47 = vxor.u32 2147483648, %v183_v26  ;;  %v325_v3 = vxor.u32 2147483648, %v324_v38 }
  0xd2   :  { %v196_v28 = vxor.u32 2147483648, %v191_v45  ;;  %v200_v33 = vsel %vm198_vm11, %v199_v47, %v191_v45  ;;  %v326_v36 = vsel %vm205_vm13, %v325_v3, %v324_v38  ;;  %v774_v3 = vld [vmem:[%s1123_s4] ss:$0 sm:$0xff] }
  0xd3   :  { %v329_v39 = vsel %vm1070_vm15, %v890_v24, %v326_v36  ;;  %v760_v24 = vld [vmem:[%s1122_s3 + $0x20] sm:$0xff] }
  0xd4   :  { %v197_v29 = vsel %vm195_vm10, %v183_v26, %v196_v28  ;;  %v331_v40 = vmul.f32 %v329_v39, %v329_v39  ;;  %609 = vmatpush.bf16.msra.mxu2 %v760_v24 }
  0xd5   :  { %v201_v34 = vsel %vm194_vm12, %v197_v29, %v200_v33 }
  0xd6   :  { %v202_v37 = vsel %vm192_vm14, nan, %v201_v34  ;;  %v332_v41 = vmul.f32 -0.001358992, %v331_v40  ;;  %v339_v19 = vmul.f32 -0.00019511016, %v331_v40 }
  0xd7   :  { %v357_v21 = vpack.c.bf16 %v202_v37, %v202_v37 }
  0xd8   :  { %v333_v43 = vadd.f32 0.041655596, %v332_v41  ;;  %v340_v32 = vadd.f32 0.008332121, %v339_v19  ;;  %610 = vmatpush.bf16.msra.mxu2 %v759_v8 }
  0xd9   :  { %499 = vmatmul.bf16.vlgmr.msra.gmra.mxu0 %v357_v21 }
  0xda   :  { %v334_v49 = vmul.f32 %v333_v43, %v331_v40  ;;  %v341_v51 = vmul.f32 %v340_v32, %v331_v40 }
  0xdc   :  { %v335_v10 = vadd.f32 -0.4999988, %v334_v49  ;;  %v342_v50 = vadd.f32 -0.16666654, %v341_v51  ;;  %611 = vmatpush.bf16.msra.mxu2 %v758_v12 }
  0xde   :  { %v336_v17 = vmul.f32 %v335_v10, %v331_v40  ;;  %v343_v56 = vmul.f32 %v342_v50, %v331_v40 }
  0xe0   :  { %v337_v55 = vadd.f32 1.0, %v336_v17  ;;  %v344_v57 = vadd.f32 1.0, %v343_v56  ;;  %612 = vmatpush.bf16.msra.mxu2 %v757_v14 }
  0xe2   :  { %v345_v60 = vmul.f32 %v344_v57, %v329_v39  ;;  %v353_v61 = vxor.u32 2147483648, %v337_v55 }
  0xe4   :  { %v350_v53 = vxor.u32 2147483648, %v345_v60  ;;  %v354_v44 = vsel %vm352_vm1, %v353_v61, %v345_v60  ;;  %613 = vmatpush.bf16.msra.mxu2 %v756_v16 }
  0xe6   :  { %v351_v63 = vsel %vm349_vm0, %v337_v55, %v350_v53 }
  0xe7   :  { %v355_v46 = vsel %vm348_vm2, %v351_v63, %v354_v44 }
  0xe8   :  { %v356_v0 = vsel %vm346_vm3, nan, %v355_v46 }
  0xe9   :  { %v358_v2 = vpack.c.bf16 %v356_v0, %v356_v0 }
  0xeb   :  { %512 = vmatmul.bf16.vlgmr.msra.gmra.mxu1 %v358_v2 }
 0x156   :  { %v500_v6 = vpop.f32.mrf.mxu0 }
 0x157   :  { %v501_v48 = vadd.f32 %v773_v15, %v500_v6 }
 0x15e   :  { %v502_v9 = vpop.f32.mrf.mxu0 }
 0x168   :  { %v513_v13 = vpop.f32.mrf.mxu1 }
 0x169   :  { %v514_v18 = vadd.f32 %v513_v13, %v501_v48 }
 0x16b   :  { %v707_v20 = vmul.f32 -1.442695, %v514_v18 }
 0x16d   :  { %777 = vpow2.f32 %v707_v20 }
 0x170   :  { %v515_v22 = vpop.f32.mrf.mxu1 }
 0x173   :  { %v778_v11 = vpop.eup %777 }
 0x174   :  { %v520_v59 = vadd.f32 1.0, %v778_v11 }
 0x176   :  { %779 = vrcp.f32 %v520_v59  ;;  %v532_v26 = vand.u32 2147483648, %v520_v59  ;;  %v530_v27 = vand.u32 2147483647, %v520_v59  ;;  %vm526_vm5 = vweird.f32 %v520_v59 }
 0x178   :  { %v533_v31 = vor.u32 1.1754944e-38, %v532_v26  ;;  %vm531_vm7 = vcmp.eq.f32.partialorder %v530_v27, 8.507059e+37 }
 0x17c   :  { %v780_v62 = vpop.eup %779 }
 0x17d   :  { %v522_v7 = vmul.f32 %v780_v62, %v520_v59  ;;  %vm527_vm4 = vweird.f32 %v780_v62 }
 0x17e   :  { %vm528_vm6 = vmor %vm526_vm5, %vm527_vm4 }
 0x17f   :  { %v523_v25 = vsub.f32 1.0, %v522_v7 }
 0x181   :  { %v524_v1 = vmul.f32 %v780_v62, %v523_v25 }
 0x183   :  { %v525_v30 = vadd.f32 %v780_v62, %v524_v1 }
 0x185   :  { %v529_v45 = vsel %vm528_vm6, %v780_v62, %v525_v30 }
 0x186   :  { %v534_v47 = vsel %vm531_vm7, %v533_v31, %v529_v45 }
 0x187   :  { %v536_v38 = vmul.f32 %v534_v47, %v514_v18 }
 0x189   :  { %v537_v28 = vpack.c.bf16 %v536_v38, %v536_v38 }
 0x18b   :  { %614 = vmatmul.bf16.vlgmr.msra.gmra.mxu2 %v537_v28 }
 0x20e   :  { %v615_v29 = vpop.f32.mrf.mxu2 }
 0x20f   :  { %v616_v33 = vadd.f32 %v774_v3, %v615_v29 }
 0x211   :  { %619 = vst [vmem:[#allocation2] sm:$0xff] %v616_v33 }
 0x212   :  { %630 = dma.vmem_to_hbm [thread:$0]  %s626_s18, 128, %s628_s21, [#allocation3]  }
 0x216   :  { %v617_v34 = vpop.f32.mrf.mxu2 }
 0x217   :  { %805 = dma.done.wait [#allocation3], 128  }
 0x218   :  { %806 = vsyncadd [#allocation3], 4294967168 }
 0x219   :  { %635 = vsyncpa [#allocation3], 1 }

</bundles_post_ra>
